<compile_context>
chip_gen: v7x
topology: tpu7x:2x2x1
jax: 0.10.0
libtpu: 0.0.40
codegen_flags: <defaults>
</compile_context>

<pallas_src>
import functools

import numpy as np
import jax
import jax.numpy as jnp
from jax.experimental import pallas as pl
from jax.experimental.pallas import tpu as pltpu


def _round_up(x: int, m: int) -> int:
    return ((x + m - 1) // m) * m


def _pick_batch_tile(batch: int, max_rows: int = 256) -> int:
    """Rows per batch tile.

    * tiny batches: one full-extent tile (block dim == array dim is legal even
      when not a multiple of 8), no batch padding at all;
    * otherwise >=2 tiles (so the "parallel" grid axes can shard across v7x's two
      TensorCores), <= max_rows rows each, rebalanced so the last tile is not
      mostly padding.  max_rows=256 fills the 256x256 MXU on v6e/v7x; use 128 on
      v5e (128x128 MXU, 1 vst slot) if spills show up.
    """
    if batch <= 64:
        return batch
    n_tiles = max(2, -(-batch // max_rows))
    return _round_up(-(-batch // n_tiles), 8)


# ----------------------------- fused Pallas kernel ---------------------------
def _fused_mlp_kernel(x_ref, w_ref, b_ref, o_ref, *, n_layer: int, fin_pad: int):
    """One whole RegressionBranch MLP for one (head, batch-tile) grid point.

    x: [tb, FinP] bf16   w: [L, P, P] bf16   b: [L, 1, P] f32   o: [tb, P] f32

    The statically-unrolled layer loop keeps the running activation in
    vregs/VMEM -- no per-layer HBM round trips.  Matmul operands are bf16 with
    f32 accumulation; bias-add / ReLU run in f32 on the VPU.
    """
    # Layer 0: only the first fin_pad rows of the (square-padded) weight matter.
    h = jnp.dot(x_ref[...], w_ref[0, :fin_pad, :],
                preferred_element_type=jnp.float32) + b_ref[0]
    for l in range(1, n_layer):
        h = jnp.maximum(h, 0.0)                      # ReLU between layers only
        h = jnp.dot(h.astype(jnp.bfloat16), w_ref[l],
                    preferred_element_type=jnp.float32) + b_ref[l]
    o_ref[...] = h.astype(o_ref.dtype)


@functools.partial(jax.jit, static_argnames=("out_feat",))
def fused_mlp_forward(x, w_stack, b_stack, *, out_feat: int):
    """y[h] = MLP_h(x[h]) for H independent, identically-shaped MLP heads,
    as a single fused Pallas call.

    x:        [H, B, fin]       float (any)
    w_stack:  [H, L, P, P]      bfloat16  (zero-padded, lane-dense)
    b_stack:  [H, L, 1, P]      float32
    returns:  [H, B, out_feat]  float32
    """
    H, B, fin = x.shape
    _, L, P, _ = w_stack.shape
    fin_pad = _round_up(fin, 128)

    # bf16 MXU operands; pad ONLY the feature dim, and only when needed -- no
    # full [b_pad, P] copy of the activations in HBM.
    x = x.astype(jnp.bfloat16)
    if fin_pad != fin:
        x = jnp.pad(x, ((0, 0), (0, 0), (0, fin_pad - fin)))

    tb = _pick_batch_tile(B)
    nb = -(-B // tb)  # ragged last tile handled by Pallas masking: rows are
                      # independent through the matmuls, OOB rows are dropped
                      # by the masked store / final slice.

    # Per-step VMEM footprint: double-buffered x/out, single-buffered w/b,
    # plus live activations; pass it (with headroom) as the scoped-VMEM limit.
    vmem_bytes = (2 * tb * fin_pad * 2 + L * P * P * 2 + L * P * 4
                  + 2 * tb * P * 4 + 4 * tb * P * 4)

    kernel = functools.partial(_fused_mlp_kernel, n_layer=L, fin_pad=fin_pad)
    y = pl.pallas_call(
        kernel,
        out_shape=jax.ShapeDtypeStruct((H, B, P), jnp.float32),
        grid_spec=pltpu.PrefetchScalarGridSpec(
            num_scalar_prefetch=0,
            grid=(H, nb),                      # heads outer, batch tiles inner
            in_specs=[
                pl.BlockSpec((None, tb, fin_pad), lambda h, i: (h, i, 0)),
                # Weights/biases only change with the (outer) head index -> not
                # re-fetched across batch tiles; single-buffered so a large P
                # does not blow v7x's scoped/physical VMEM.
                pl.BlockSpec((None, L, P, P), lambda h, i: (h, 0, 0, 0),
                             pipeline_mode=pl.Buffered(1)),
                pl.BlockSpec((None, L, 1, P), lambda h, i: (h, 0, 0, 0),
                             pipeline_mode=pl.Buffered(1)),
            ],
            out_specs=pl.BlockSpec((None, tb, P), lambda h, i: (h, i, 0)),
        ),
        compiler_params=pltpu.CompilerParams(
            dimension_semantics=("parallel", "parallel"),
            vmem_limit_bytes=int(min(max(2 * vmem_bytes, 32 << 20), 64 << 20)),
        ),
    )(x, w_stack, b_stack)

    # Lane-dense kernel output; slice to the true (possibly 1-wide) width here.
    return y[:, :, :out_feat]


# --------------------------- Module (parameters) -----------------------------
class RegressionBranchPallas:
    """Mirror of STA_DTA/multi/modelzoo.py::RegressionBranch forward semantics,
    generalized to `num_heads` independent heads with identical layer shapes
    (HetTransformer.reg_dict = one head per v_id).  All heads are evaluated with
    ONE fused Pallas call."""

    def __init__(self, in_feat, h_feat, out_feat, n_layer=1, num_heads=1, *, key):
        self.n_layer = int(n_layer)
        self.out_feat = int(out_feat)
        self.num_heads = int(num_heads)

        if self.n_layer == 1:
            dims = [(in_feat, out_feat)]
        else:
            dims = ([(in_feat, h_feat)]
                    + [(h_feat, h_feat)] * (self.n_layer - 2)
                    + [(h_feat, out_feat)])
        self.dims = dims

        def init_linear(k, fan_in, fan_out):
            # PyTorch nn.Linear default init: U(-1/sqrt(fan_in), +1/sqrt(fan_in)).
            kw, kb = jax.random.split(k)
            bound = 1.0 / float(fan_in) ** 0.5
            W = jax.random.uniform(kw, (fan_in, fan_out), jnp.float32, -bound, bound)
            b = jax.random.uniform(kb, (1, fan_out), jnp.float32, -bound, bound)
            return W, b

        # Unpadded f32 parameters (per head, in application order): used by the
        # pure-JAX references below.
        self.params = []
        for hk in jax.random.split(key, self.num_heads):
            lks = jax.random.split(hk, len(dims))
            self.params.append(
                [init_linear(k, fi, fo) for k, (fi, fo) in zip(lks, dims)])

        # Pack every head/layer into one lane-dense, zero-padded stack:
        #   w_stack [H, L, P, P] bf16,  b_stack [H, L, 1, P] f32.
        # Zero-padded weight rows/cols + zero bias lanes + ReLU(0)=0 keep the
        # padding exactly inert; the last layer correctly skips ReLU.
        P = _round_up(max(max(fi, fo) for fi, fo in dims), 128)
        L = len(dims)
        w = np.zeros((self.num_heads, L, P, P), np.float32)
        b = np.zeros((self.num_heads, L, 1, P), np.float32)
        for h in range(self.num_heads):
            for l, ((W, bias), (fi, fo)) in enumerate(zip(self.params[h], dims)):
                w[h, l, :fi, :fo] = np.asarray(W)
                b[h, l, :, :fo] = np.asarray(bias)
        self.w_stack = jnp.asarray(w).astype(jnp.bfloat16)   # MXU operands
        self.b_stack = jnp.asarray(b)                        # f32 bias-add
        self.P = P

    def __call__(self, x):
        # x: [H, B, in_feat]  (or [B, in_feat] when num_heads == 1)
        squeeze = x.ndim == 2
        if squeeze:
            x = x[None]
        y = fused_mlp_forward(x, self.w_stack, self.b_stack,
                              out_feat=self.out_feat)
        return y[0] if squeeze else y


# ----------------------------- references (JAX) -------------------------------
def reference_forward_f32(head_params, x):
    """Pure-f32 mirror of RegressionBranch.forward for one head."""
    h = x
    n = len(head_params)
    for l, (W, b) in enumerate(head_params):
        h = h @ W + b
        if l < n - 1:
            h = jnp.maximum(h, 0.0)
    return h


def reference_forward_bf16(head_params, x):
    """Same math as the kernel: bf16 matmul operands, f32 accumulation,
    f32 bias-add / ReLU."""
    h = x.astype(jnp.float32)
    n = len(head_params)
    for l, (W, b) in enumerate(head_params):
        h = jnp.dot(h.astype(jnp.bfloat16), W.astype(jnp.bfloat16),
                    preferred_element_type=jnp.float32) + b
        if l < n - 1:
            h = jnp.maximum(h, 0.0)
    return h


if __name__ == "__main__":
    key = jax.random.PRNGKey(0)
    kx, k1, k2, k3, k4 = jax.random.split(key, 5)

    # Small shapes consistent with HetTransformer (h_feats=16, num_head=2,
    # 3 entries in v_id_list):
    #   pre_reg    : n_layer=2                       (single head)
    #   reg_dict   : n_layer=5, out_feat=1           (3 per-edge heads, ONE call)
    #   cross_conv : n_layer=3                       (single head)
    #   single     : n_layer=1 degenerate case
    h_feats, num_head, n_vid = 16, 2, 3
    configs = [
        # name          H      B   in_feat                        h_feat out nl  key
        ("pre_reg",     1,     24, 16,                              32,  32, 2, k1),
        ("reg_dict",    n_vid, 16, h_feats * num_head * 2 + 2 + 4, 128,   1, 5, k2),
        ("cross_conv",  1,      8, h_feats * num_head * n_vid,      64,  64, 3, k3),
        ("single",      1,      8, 32,                              32,   1, 1, k4),
    ]

    xkeys = jax.random.split(kx, len(configs))
    for (name, H, B, fi, fh, fo, nl, km), kxi in zip(configs, xkeys):
        x = jax.random.normal(kxi, (H, B, fi), jnp.float32)
        model = RegressionBranchPallas(fi, fh, fo, n_layer=nl, num_heads=H, key=km)

        out = jax.block_until_ready(model(x))
        assert out.shape == (H, B, fo), (name, out.shape)

        for h in range(H):
            ref_bf16 = reference_forward_bf16(model.params[h], x[h])
            ref_f32 = reference_forward_f32(model.params[h], x[h])
            # Tight check against a reference doing the same bf16-operand /
            # f32-accumulate math; loose sanity check against the pure-f32 MLP.
            assert jnp.allclose(out[h], ref_bf16, atol=5e-3, rtol=5e-3), (
                f"{name}[head {h}]: mismatch vs bf16-operand reference")
            assert jnp.allclose(out[h], ref_f32, atol=8e-2, rtol=8e-2), (
                f"{name}[head {h}]: mismatch vs f32 reference")

    print("KERNEL_OK")
</pallas_src>

<mosaic_0001>
module attributes {stable_mosaic.version = 11 : i64} {
  func.func @_fused_mlp_kernel(%arg0: i32, %arg1: i32, %arg2: memref<1x24x128xbf16, #tpu.memory_space<vmem>>, %arg3: memref<1x2x128x128xbf16, #tpu.memory_space<vmem>>, %arg4: memref<1x2x1x128xf32, #tpu.memory_space<vmem>>, %arg5: memref<1x24x128xf32, #tpu.memory_space<vmem>>) attributes {dimension_semantics = [#tpu.dimension_semantics<parallel>, #tpu.dimension_semantics<parallel>], iteration_bounds = array<i64: 1, 1>, scalar_prefetch = 0 : i64, scratch_operands = 0 : i64, tpu.core_type = #tpu.core_type<tc>, window_params = [{transform_indices = @transform_0, window_bounds = array<i64: 1, 24, 128>}, {pipeline_mode = #tpu.pipeline_mode<synchronous>, transform_indices = @transform_1, window_bounds = array<i64: 1, 2, 128, 128>}, {pipeline_mode = #tpu.pipeline_mode<synchronous>, transform_indices = @transform_2, window_bounds = array<i64: 1, 2, 1, 128>}, {transform_indices = @transform_3, window_bounds = array<i64: 1, 24, 128>}]} {
    %c0 = arith.constant 0 : index
    %c0_0 = arith.constant 0 : index
    %c0_1 = arith.constant 0 : index
    %0 = vector.load %arg2[%c0, %c0_0, %c0_1] : memref<1x24x128xbf16, #tpu.memory_space<vmem>>, vector<1x24x128xbf16>
    %1 = vector.shape_cast %0 : vector<1x24x128xbf16> to vector<24x128xbf16>
    %c0_2 = arith.constant 0 : index
    %c0_3 = arith.constant 0 : index
    %c0_4 = arith.constant 0 : index
    %c0_5 = arith.constant 0 : index
    %2 = vector.load %arg3[%c0_2, %c0_3, %c0_4, %c0_5] : memref<1x2x128x128xbf16, #tpu.memory_space<vmem>>, vector<1x1x128x128xbf16>
    %3 = vector.shape_cast %2 : vector<1x1x128x128xbf16> to vector<128x128xbf16>
    %cst = arith.constant dense<0.000000e+00> : vector<24x128xf32>
    %4 = tpu.matmul %1, %3, %cst {dimension_numbers = #tpu.dot_dimension_numbers<[1], [0], [0], [1], [0, 0, 1, 1], [], []>} : vector<24x128xbf16>, vector<128x128xbf16>, vector<24x128xf32> -> vector<24x128xf32>
    %c0_6 = arith.constant 0 : index
    %c0_7 = arith.constant 0 : index
    %c0_8 = arith.constant 0 : index
    %c0_9 = arith.constant 0 : index
    %5 = vector.load %arg4[%c0_6, %c0_7, %c0_8, %c0_9] : memref<1x2x1x128xf32, #tpu.memory_space<vmem>>, vector<1x1x1x128xf32>
    %6 = vector.shape_cast %5 : vector<1x1x1x128xf32> to vector<1x128xf32>
    %7 = vector.broadcast %6 : vector<1x128xf32> to vector<24x128xf32>
    %8 = arith.addf %4, %7 : vector<24x128xf32>
    %cst_10 = arith.constant 0.000000e+00 : f32
    %9 = vector.broadcast %cst_10 : f32 to vector<24x128xf32>
    %10 = arith.maximumf %8, %9 : vector<24x128xf32>
    %11 = arith.truncf %10 : vector<24x128xf32> to vector<24x128xbf16>
    %c0_11 = arith.constant 0 : index
    %c1 = arith.constant 1 : index
    %c0_12 = arith.constant 0 : index
    %c0_13 = arith.constant 0 : index
    %12 = vector.load %arg3[%c0_11, %c1, %c0_12, %c0_13] : memref<1x2x128x128xbf16, #tpu.memory_space<vmem>>, vector<1x1x128x128xbf16>
    %13 = vector.shape_cast %12 : vector<1x1x128x128xbf16> to vector<128x128xbf16>
    %cst_14 = arith.constant dense<0.000000e+00> : vector<24x128xf32>
    %14 = tpu.matmul %11, %13, %cst_14 {dimension_numbers = #tpu.dot_dimension_numbers<[1], [0], [0], [1], [0, 0, 1, 1], [], []>} : vector<24x128xbf16>, vector<128x128xbf16>, vector<24x128xf32> -> vector<24x128xf32>
    %c0_15 = arith.constant 0 : index
    %c1_16 = arith.constant 1 : index
    %c0_17 = arith.constant 0 : index
    %c0_18 = arith.constant 0 : index
    %15 = vector.load %arg4[%c0_15, %c1_16, %c0_17, %c0_18] : memref<1x2x1x128xf32, #tpu.memory_space<vmem>>, vector<1x1x1x128xf32>
    %16 = vector.shape_cast %15 : vector<1x1x1x128xf32> to vector<1x128xf32>
    %17 = vector.broadcast %16 : vector<1x128xf32> to vector<24x128xf32>
    %18 = arith.addf %14, %17 : vector<24x128xf32>
    %c0_19 = arith.constant 0 : index
    %c0_20 = arith.constant 0 : index
    %c0_21 = arith.constant 0 : index
    %19 = vector.load %arg5[%c0_19, %c0_20, %c0_21] : memref<1x24x128xf32, #tpu.memory_space<vmem>>, vector<1x24x128xf32>
    %20 = vector.shape_cast %19 : vector<1x24x128xf32> to vector<24x128xf32>
    %21 = vector.shape_cast %18 : vector<24x128xf32> to vector<1x24x128xf32>
    tpu.vector_store %arg5[%c0_19, %c0_20, %c0_21], %21 {strides = array<i32>} : memref<1x24x128xf32, #tpu.memory_space<vmem>>, vector<1x24x128xf32>,
    return
  }
  func.func @transform_0(%arg0: i32, %arg1: i32) -> (i32, i32, i32) {
    %c0_i32 = arith.constant 0 : i32
    %c0_i32_0 = arith.constant 0 : i32
    return %arg0, %arg1, %c0_i32 : i32, i32, i32
  }
  func.func @transform_1(%arg0: i32, %arg1: i32) -> (i32, i32, i32, i32) {
    %c0_i32 = arith.constant 0 : i32
    %c0_i32_0 = arith.constant 0 : i32
    %c0_i32_1 = arith.constant 0 : i32
    %c0_i32_2 = arith.constant 0 : i32
    return %arg0, %c0_i32, %c0_i32_0, %c0_i32_1 : i32, i32, i32, i32
  }
  func.func @transform_2(%arg0: i32, %arg1: i32) -> (i32, i32, i32, i32) {
    %c0_i32 = arith.constant 0 : i32
    %c0_i32_0 = arith.constant 0 : i32
    %c0_i32_1 = arith.constant 0 : i32
    %c0_i32_2 = arith.constant 0 : i32
    return %arg0, %c0_i32, %c0_i32_0, %c0_i32_1 : i32, i32, i32, i32
  }
  func.func @transform_3(%arg0: i32, %arg1: i32) -> (i32, i32, i32) {
    %c0_i32 = arith.constant 0 : i32
    %c0_i32_0 = arith.constant 0 : i32
    return %arg0, %arg1, %c0_i32 : i32, i32, i32
  }
}

</mosaic_0001>

<bundles_post_ra>
// kernel: fused_mlp_forward.1
= control target key start
LH: loop header
LB: loop body
LE: loop exit
PB: predicated region body
PF: predicated region fallthrough
CT: control target
= control target key end

     0   :  { %8 = vsyncpa [#allocation3], 0  ;;  %s523_s0 = inlined_call_operand.vmem [shape: bf16[1,24,128], index: 0, kind: input, shape index: {}]   ;;  %s524_s1 = inlined_call_operand.hbm [shape: bf16[1,2,128,128], index: 1, kind: input, shape index: {}]   ;;  %s525_s2 = inlined_call_operand.vmem [shape: f32[1,2,1,128], index: 2, kind: input, shape index: {}]   ;;  %s526_s3 = inlined_call_operand.hbm [shape: f32[1,24,128], index: 3, kind: output, shape index: {}]  }
   0x1   :  { %9 = vsyncpa [#allocation4], 0  ;;  %s461_s12 = smov [#allocation2]   ;;  %s413_s16 = scalar_lea.hbm %s524_s1, 2048 }
   0x2   :  { %s17_s13 = sshll.u32 %s461_s12, 4  ;;  %p414_p0 = scmp.ne.s32.totalorder %s524_s1, %s413_s16  ;;  %s18_s13 = int_to_ptr.vmem [resolvable:$true] %s17_s13 }
   0x3   :  { %p417_p1 = scmp.lt.u32.totalorder %s413_s16, %s524_s1 }
   0x5   :  { %p419_p2 = pnand %p417_p1, %p414_p0 }
   0x7   :  { %422 = shalt.err (!%p419_p2)
}
   0x8   :  { %s423_s21 = scalar_lea.vmem %s18_s13, 2048  ;;  %p428_p4 = scmp.lt.s32.totalorder %s18_s13, %s18_s13 }
   0x9   :  { %p424_p3 = scmp.ne.s32.totalorder %s18_s13, %s423_s21  ;;  %p429_p5 = scmp.lt.s32.totalorder %s423_s21, %s423_s21 }
   0xb   :  { %p430_p6 = por %p429_p5, %p428_p4 }
   0xd   :  { %p431_p7 = pnand %p430_p6, %p424_p3 }
   0xf   :  { %434 = shalt.err (!%p431_p7)
}
  0x10   :  { %s462_s22 = smov 64   ;;  %s463_s23 = smov 4  }
  0x11   :  { %23 = dma.hbm_to_vmem [thread:$0]  %s524_s1, 2048, %s18_s13, [#allocation3], %s462_s22, %s462_s22, %s463_s23  }
  0x12   :  { %457 = dma.done.wait [#allocation3], 2048  }
  0x13   :  { %458 = vsyncadd [#allocation3], 4294965248  ;;  %v395_v0 = vld [vmem:[#allocation2] sm:$0xff]   ;;  %v396_v1 = vld [vmem:[#allocation2 + $0x8] sm:$0xff]   ;;  %s464_s5 = smov [#allocation5]  }
  0x14   :  { %349 = vmatprep.subr.bf16.mxu0 %v395_v0  ;;  %v397_v2 = vld [vmem:[#allocation2 + $0x10] sm:$0xff]   ;;  %v398_v3 = vld [vmem:[#allocation2 + $0x18] sm:$0xff]   ;;  %v403_v4 = vld [vmem:[%s523_s0] sm:$0xff]   ;;  %s296_s6 = sshll.u32 %s464_s5, 4  ;;  %s297_s6 = int_to_ptr.vmem [resolvable:$true] %s296_s6 }
  0x15   :  { %350 = vmatpush3.bf16.msra.mxu0 %v395_v0  ;;  %365 = vmatprep.mubr.bf16.mxu0 %v403_v4  ;;  %v405_v5 = vld [vmem:[#allocation2 + $0x40] sm:$0xff]   ;;  %v406_v6 = vld [vmem:[#allocation2 + $0x48] sm:$0xff]   ;;  %v407_v8 = vld [vmem:[#allocation2 + $0x50] sm:$0xff]   ;;  %s435_s7 = scalar_lea.vmem %s297_s6, 384  ;;  %p440_p9 = scmp.lt.s32.totalorder %s297_s6, %s297_s6 }
  0x16   :  { %351 = vmatprep.subr.bf16.mxu0 %v396_v1  ;;  %v399_v7 = vld [vmem:[#allocation2 + $0x20] sm:$0xff]   ;;  %369 = vmatprep.subr.bf16.mxu1 %v405_v5  ;;  %v400_v9 = vld [vmem:[#allocation2 + $0x28] sm:$0xff]   ;;  %v408_v10 = vld [vmem:[#allocation2 + $0x58] sm:$0xff]   ;;  %p436_p8 = scmp.ne.s32.totalorder %s297_s6, %s435_s7  ;;  %p441_p10 = scmp.lt.s32.totalorder %s435_s7, %s435_s7 }
  0x17   :  { %370 = vmatpush3.bf16.msra.mxu1 %v405_v5  ;;  %v401_v11 = vld [vmem:[#allocation2 + $0x30] sm:$0xff]   ;;  %v409_v12 = vld [vmem:[#allocation2 + $0x60] sm:$0xff]   ;;  %v402_v13 = vld [vmem:[#allocation2 + $0x38] sm:$0xff]  }
  0x18   :  { %371 = vmatprep.subr.bf16.mxu1 %v406_v6  ;;  %v410_v14 = vld [vmem:[#allocation2 + $0x68] sm:$0xff]   ;;  %v411_v16 = vld [vmem:[#allocation2 + $0x70] sm:$0xff]   ;;  %v412_v17 = vld [vmem:[#allocation2 + $0x78] sm:$0xff]   ;;  %p442_p11 = por %p441_p10, %p440_p9 }
  0x19   :  { %352 = vmatpush3.bf16.msra.mxu0 %v396_v1  ;;  %v404_v15 = vld [vmem:[%s523_s0 + $0x8] ss:$0 sps:$4 sm:$0xff]   ;;  %v308_v18 = vld [vmem:[%s525_s2] ss:$0 sm:$0xff]  ;;  %v320_v31 = vld [vmem:[%s525_s2 + $0x1] ss:$0 sm:$0xff] }
  0x1a   :  { %353 = vmatprep.subr.bf16.mxu0 %v397_v2  ;;  %p443_p12 = pnand %p442_p11, %p436_p8 }
  0x1b   :  { %372 = vmatpush3.bf16.msra.mxu1 %v406_v6 }
  0x1c   :  { %373 = vmatprep.subr.bf16.mxu1 %v407_v8 }
  0x1d   :  { %354 = vmatpush3.bf16.msra.mxu0 %v397_v2 }
  0x1e   :  { %355 = vmatprep.subr.bf16.mxu0 %v398_v3 }
  0x1f   :  { %374 = vmatpush3.bf16.msra.mxu1 %v407_v8 }
  0x20   :  { %375 = vmatprep.subr.bf16.mxu1 %v408_v10 }
  0x21   :  { %356 = vmatpush3.bf16.msra.mxu0 %v398_v3 }
  0x22   :  { %357 = vmatprep.subr.bf16.mxu0 %v399_v7 }
  0x23   :  { %376 = vmatpush3.bf16.msra.mxu1 %v408_v10 }
  0x24   :  { %377 = vmatprep.subr.bf16.mxu1 %v409_v12 }
  0x25   :  { %358 = vmatpush3.bf16.msra.mxu0 %v399_v7 }
  0x26   :  { %359 = vmatprep.subr.bf16.mxu0 %v400_v9 }
  0x27   :  { %378 = vmatpush3.bf16.msra.mxu1 %v409_v12 }
  0x28   :  { %379 = vmatprep.subr.bf16.mxu1 %v410_v14 }
  0x29   :  { %360 = vmatpush3.bf16.msra.mxu0 %v400_v9 }
  0x2a   :  { %361 = vmatprep.subr.bf16.mxu0 %v401_v11 }
  0x2b   :  { %380 = vmatpush3.bf16.msra.mxu1 %v410_v14 }
  0x2c   :  { %381 = vmatprep.subr.bf16.mxu1 %v411_v16 }
  0x2d   :  { %362 = vmatpush3.bf16.msra.mxu0 %v401_v11 }
  0x2e   :  { %363 = vmatprep.subr.bf16.mxu0 %v402_v13 }
  0x2f   :  { %382 = vmatpush3.bf16.msra.mxu1 %v411_v16 }
  0x30   :  { %383 = vmatprep.subr.bf16.mxu1 %v412_v17 }
  0x31   :  { %364 = vmatpush3.bf16.msra.mxu0 %v402_v13 }
  0x33   :  { %384 = vmatpush3.bf16.msra.mxu1 %v412_v17 }
  0x34   :  { %366 = vmatmul.mubr.bf16.vlgmr.msra.gmra.mrb[0].mxu0 %v404_v15 }
 0x107   :  { %v367_v19 = vpop.f32.mrb[0].mxu0 }
 0x108   :  { %v157_v20 = vadd.f32 %v367_v19, %v308_v18  ;;  %v148_v21 = vpop.f32.mrb[1].mxu0 }
 0x109   :  { %v149_v22 = vadd.f32 %v308_v18, %v148_v21  ;;  %v368_v23 = vpop.f32.mrb[2].mxu0 }
 0x10a   :  { %v151_v24 = vpop.f32.mrb[3].mxu0  ;;  %v164_v26 = vmax.f32 %v157_v20, 0.0 }
 0x10b   :  { %v152_v25 = vadd.f32 %v308_v18, %v151_v24  ;;  %v162_v27 = vmax.f32 %v149_v22, 0.0 }
 0x10c   :  { %v166_v30 = vpack.c.bf16 %v164_v26, %v164_v26 }
 0x10d   :  { %v163_v28 = vmax.f32 %v152_v25, 0.0 }
 0x10f   :  { %v165_v29 = vpack.c.bf16 %v163_v28, %v162_v27 }
 0x111   :  { %385 = vmatprep.mubr.bf16.mxu1 %v165_v29 }
 0x112   :  { %386 = vmatmul.mubr.bf16.vlgmr.msra.gmra.mrb[0].mxu1 %v166_v30 }
 0x1e5   :  { %v387_v32 = vpop.f32.mrb[0].mxu1 }
 0x1e6   :  { %v283_v33 = vadd.f32 %v387_v32, %v320_v31  ;;  %v274_v34 = vpop.f32.mrb[1].mxu1 }
 0x1e7   :  { %v275_v35 = vadd.f32 %v320_v31, %v274_v34  ;;  %v388_v36 = vpop.f32.mrb[2].mxu1 }
 0x1e8   :  { %290 = vst [vmem:[#allocation5 + $0x10] sm:$0xff] %v283_v33  ;;  %v277_v37 = vpop.f32.mrb[3].mxu1 }
 0x1e9   :  { %288 = vst [vmem:[#allocation5] sm:$0xff] %v275_v35  ;;  %v278_v38 = vadd.f32 %v320_v31, %v277_v37 }
 0x1eb   :  { %289 = vst [vmem:[#allocation5 + $0x8] sm:$0xff] %v278_v38 }
 0x1ec   :  { %446 = shalt.err (!%p443_p12)
}
 0x1ed   :  { %s447_s9 = scalar_lea.hbm %s526_s3, 384 }
 0x1ee   :  { %p448_p13 = scmp.ne.s32.totalorder %s526_s3, %s447_s9  ;;  %p451_p0 = scmp.lt.u32.totalorder %s447_s9, %s526_s3 }
 0x1f0   :  { %p453_p1 = pnand %p451_p0, %p448_p13 }
 0x1f2   :  { %456 = shalt.err (!%p453_p1)
}
 0x1f3   :  { %s465_s14 = smov 128   ;;  %s466_s15 = smov 8  }
 0x1f4   :  { %302 = dma.vmem_to_hbm [thread:$0]  %s297_s6, 384, %s526_s3, [#allocation4], %s465_s14, %s465_s14, %s466_s15  }
 0x1f5   :  { %459 = dma.done.wait [#allocation4], 384  }
 0x1f6   :  { %460 = vsyncadd [#allocation4], 4294966912 }
 0x1f7   :  { %306 = vsyncpa [#allocation3], 1 }
 0x1f8   :  { %307 = vsyncpa [#allocation4], 1 }

</bundles_post_ra>
